<compile_context>
chip_gen: v6e
topology: v6e:2x2x1
jax: 0.10.0
libtpu: 0.0.40
codegen_flags: <defaults>
</compile_context>

<pallas_src>
import jax
import jax.numpy as jnp
from jax import lax
from jax.experimental import pallas as pl
from jax.experimental.pallas import tpu as pltpu

NEG_SLOPE = 0.01  # torch.nn.LeakyReLU default


def _leaky_relu(h):
    return jnp.where(h > 0, h, NEG_SLOPE * h)


def _round_up(a, m):
    return ((a + m - 1) // m) * m


def node_model_kernel(off_ref, cnt_ref,                      # scalar prefetch (SMEM)
                      x_ref, ea_ref, col_ref, batch_ref,
                      w1x_ref, w1e_ref, uw1_ref, b1_ref,
                      w2_ref, b2_ref, w3_ref, b3_ref,
                      out_ref, acc_ref):
    i = pl.program_id(0)            # node-tile index   (parallel)
    k = pl.program_id(1)            # edge-tile step    (reduction, last axis)
    nk = pl.num_programs(1)
    tile_n = acc_ref.shape[0]

    # ---- init hidden-space accumulator at the start of the edge reduction ----
    @pl.when(k == 0)
    def _():
        acc_ref[...] = jnp.zeros_like(acc_ref)

    # ---- scatter_add directly into hidden space (only for relevant tiles) ----
    @pl.when(k < cnt_ref[i])
    def _():
        # project edge features into hidden space: [TILE_E, H_pad]
        ea_proj = jnp.dot(ea_ref[...], w1e_ref[...],
                          preferred_element_type=jnp.float32).astype(jnp.bfloat16)
        # cheap one-hot: local col vs a k-invariant row iota, built in bf16
        col_local = col_ref[...] - i * tile_n                       # [1, TILE_E]
        row_iota = lax.broadcasted_iota(jnp.int32, (tile_n, 1), 0)  # [TILE_N, 1]
        onehot = (row_iota == col_local).astype(jnp.bfloat16)       # [TILE_N, TILE_E]
        acc_ref[...] += jnp.dot(onehot, ea_proj,
                                preferred_element_type=jnp.float32)

    # ---- epilogue: remaining first-layer terms + MLP, lane-dense store ----
    @pl.when(k == nk - 1)
    def _():
        n_graphs = uw1_ref.shape[0]
        bidx = batch_ref[...]                                        # [TILE_N, 1]
        graph_iota = lax.broadcasted_iota(jnp.int32, (tile_n, n_graphs), 1)
        onehot_nb = (bidx == graph_iota).astype(jnp.float32)         # [TILE_N, B]

        h = (jnp.dot(x_ref[...], w1x_ref[...], preferred_element_type=jnp.float32)
             + jnp.dot(onehot_nb, uw1_ref[...], preferred_element_type=jnp.float32)
             + acc_ref[...]
             + b1_ref[...])
        h = _leaky_relu(h)
        h = jnp.dot(h, w2_ref[...], preferred_element_type=jnp.float32) + b2_ref[...]
        h = _leaky_relu(h)
        h = jnp.dot(h, w3_ref[...], preferred_element_type=jnp.float32) + b3_ref[...]
        out_ref[...] = h.astype(out_ref.dtype)


def node_model_forward(x, edge_index, edge_attr, u, batch, params,
                       tile_n=256, tile_e=2048):
    """params = (w1, b1, w2, b2, w3, b3); weights are [in, out], biases [out].

    NOTE: meant to be called eagerly (edge-tile schedule / grid extent are
    derived from concrete col values).
    """
    N, Fn = x.shape
    E, Fe = edge_attr.shape
    B, Fg = u.shape
    w1, b1, w2, b2, w3, b3 = params
    H = w1.shape[1]
    T = w3.shape[1]
    f32 = jnp.float32

    # ---- tile sizes ----
    TILE_N = min(tile_n, _round_up(N, 8))
    # v7x has 2 TensorCores: make sure the parallel axis has >=2 tiles if possible
    if _round_up(N, TILE_N) // TILE_N < 2 and TILE_N >= 16:
        TILE_N = max(8, _round_up(TILE_N // 2, 8))
    N_pad = _round_up(N, TILE_N)
    num_n_tiles = N_pad // TILE_N

    TILE_E = min(tile_e, _round_up(E, 128))
    E_pad = _round_up(E, TILE_E)
    num_e_tiles = E_pad // TILE_E

    H_pad = _round_up(H, 128)
    T_pad = _round_up(T, 128)

    # ---- sort edges by destination node; pad with a non-matching sentinel ----
    col = edge_index[1].astype(jnp.int32)
    order = jnp.argsort(col)
    col_s = col[order]
    ea_s = edge_attr.astype(f32)[order]
    col_p = jnp.full((1, E_pad), N_pad, jnp.int32).at[0, :E].set(col_s)
    ea_p = jnp.zeros((E_pad, Fe), f32).at[:E].set(ea_s)

    x_p = jnp.zeros((N_pad, Fn), f32).at[:N].set(x.astype(f32))
    batch_p = jnp.zeros((N_pad, 1), jnp.int32).at[:N, 0].set(batch.astype(jnp.int32))

    # ---- per-node-tile edge-tile ranges (scalar-prefetch metadata) ----
    col_sorted = col_p[0]
    bounds = jnp.arange(num_n_tiles + 1, dtype=jnp.int32) * TILE_N
    starts = jnp.searchsorted(col_sorted, bounds[:-1], side="left")
    ends = jnp.searchsorted(col_sorted, bounds[1:], side="left")
    start_tiles = starts // TILE_E
    end_tiles = (ends + TILE_E - 1) // TILE_E
    raw_counts = jnp.where(ends > starts, end_tiles - start_tiles, 0)
    max_k = int(jnp.maximum(1, raw_counts.max()))           # static grid extent
    # clamp offsets so off[i] + k stays in bounds for every grid step; the
    # one-hot masks any extra (non-matching) edges, so coverage stays exact.
    offs = jnp.clip(start_tiles, 0, num_e_tiles - max_k).astype(jnp.int32)
    counts = jnp.where(ends > starts, end_tiles - offs, 0).astype(jnp.int32)

    # ---- weights: split w1, fold u @ w1u, zero-pad widths to 128 lanes ----
    w1 = w1.astype(f32); w2 = w2.astype(f32); w3 = w3.astype(f32)
    w1x = jnp.zeros((Fn, H_pad), f32).at[:, :H].set(w1[:Fn])
    w1e = jnp.zeros((Fe, H_pad), f32).at[:, :H].set(w1[Fn:Fn + Fe])
    uw1 = jnp.zeros((B, H_pad), f32).at[:, :H].set(u.astype(f32) @ w1[Fn + Fe:])
    b1_p = jnp.zeros((1, H_pad), f32).at[0, :H].set(b1.astype(f32))
    w2_p = jnp.zeros((H_pad, H_pad), f32).at[:H, :H].set(w2)
    b2_p = jnp.zeros((1, H_pad), f32).at[0, :H].set(b2.astype(f32))
    w3_p = jnp.zeros((H_pad, T_pad), f32).at[:H, :T].set(w3)
    b3_p = jnp.zeros((1, T_pad), f32).at[0, :T].set(b3.astype(f32))

    grid = (num_n_tiles, max_k)

    def full(shape):
        # tiny weights / globals: fully resident, same block every grid step
        return pl.BlockSpec(shape, lambda i, k, off, cnt: (0, 0))

    in_specs = [
        pl.BlockSpec((TILE_N, Fn), lambda i, k, off, cnt: (i, 0)),           # x
        pl.BlockSpec((TILE_E, Fe), lambda i, k, off, cnt: (off[i] + k, 0)),  # edge_attr (sorted)
        pl.BlockSpec((1, TILE_E), lambda i, k, off, cnt: (0, off[i] + k)),   # col (sorted)
        pl.BlockSpec((TILE_N, 1), lambda i, k, off, cnt: (i, 0)),            # batch
        full((Fn, H_pad)), full((Fe, H_pad)), full((B, H_pad)), full((1, H_pad)),
        full((H_pad, H_pad)), full((1, H_pad)),
        full((H_pad, T_pad)), full((1, T_pad)),
    ]
    out_spec = pl.BlockSpec((TILE_N, T_pad), lambda i, k, off, cnt: (i, 0))

    flops = (2 * num_n_tiles * max_k * TILE_E * H_pad * (Fe + TILE_N)
             + num_n_tiles * TILE_N * 2 * (Fn * H_pad + B * H_pad
                                           + H_pad * H_pad + H_pad * T_pad))
    weight_bytes = sum(a.size * a.dtype.itemsize
                       for a in (w1x, w1e, uw1, b1_p, w2_p, b2_p, w3_p, b3_p))
    bytes_accessed = int(num_n_tiles * max_k * TILE_E * (Fe * 4 + 4)   # edge stream
                         + N_pad * (Fn * 4 + 4)                        # x + batch
                         + weight_bytes
                         + N_pad * T_pad * 4)                          # output
    cost = pl.CostEstimate(flops=int(flops), transcendentals=0,
                           bytes_accessed=bytes_accessed)

    grid_spec = pltpu.PrefetchScalarGridSpec(
        num_scalar_prefetch=2,
        grid=grid,
        in_specs=in_specs,
        out_specs=out_spec,
        scratch_shapes=[pltpu.VMEM((TILE_N, H_pad), f32)],
    )

    out_pad = pl.pallas_call(
        node_model_kernel,
        out_shape=jax.ShapeDtypeStruct((N_pad, T_pad), f32),
        grid_spec=grid_spec,
        compiler_params=pltpu.CompilerParams(
            dimension_semantics=("parallel", "arbitrary"),
            vmem_limit_bytes=48 * 1024 * 1024),
        cost_estimate=cost,
    )(offs, counts, x_p, ea_p, col_p, batch_p,
      w1x, w1e, uw1, b1_p, w2_p, b2_p, w3_p, b3_p)

    return out_pad[:N, :T]


def _ref_forward(x, edge_index, edge_attr, u, batch, params):
    """Pure-JAX reference of the PyTorch forward (sanity check)."""
    w1, b1, w2, b2, w3, b3 = params
    col = edge_index[1]
    agg = jax.ops.segment_sum(edge_attr, col, num_segments=x.shape[0])
    feat = jnp.concatenate([x, agg, u[batch]], axis=1)
    h = _leaky_relu(feat @ w1 + b1)
    h = _leaky_relu(h @ w2 + b2)
    return h @ w3 + b3


def _make_case(key, n_nodes, n_edges, n_graphs, fn, fe, fg, hid, tgt):
    keys = jax.random.split(key, 8)
    x = jax.random.normal(keys[0], (n_nodes, fn), jnp.float32)
    edge_attr = jax.random.normal(keys[1], (n_edges, fe), jnp.float32)
    u = jax.random.normal(keys[2], (n_graphs, fg), jnp.float32)
    row = jax.random.randint(keys[3], (n_edges,), 0, n_nodes, jnp.int32)
    col = jax.random.randint(keys[4], (n_edges,), 0, n_nodes, jnp.int32)
    edge_index = jnp.stack([row, col], axis=0)
    half = n_nodes // 2
    batch = jnp.concatenate([jnp.zeros(half, jnp.int32),
                             jnp.ones(n_nodes - half, jnp.int32)])

    def lin_init(k, fan_in, fan_out):
        kw, kb = jax.random.split(k)
        bound = 1.0 / jnp.sqrt(fan_in)
        w = jax.random.uniform(kw, (fan_in, fan_out), jnp.float32, -bound, bound)
        b = jax.random.uniform(kb, (fan_out,), jnp.float32, -bound, bound)
        return w, b

    f_in = fn + fe + fg
    w1, b1 = lin_init(keys[5], f_in, hid)
    w2, b2 = lin_init(keys[6], hid, hid)
    w3, b3 = lin_init(keys[7], hid, tgt)
    return x, edge_index, edge_attr, u, batch, (w1, b1, w2, b2, w3, b3)


if __name__ == "__main__":
    key = jax.random.PRNGKey(0)
    k1, k2 = jax.random.split(key)

    # ---- small shapes consistent with the module ----
    N_NODES, N_EDGES, N_GRAPHS = 8, 16, 2
    FN, FE, FG, HID, TGT = 4, 4, 4, 32, 8
    case = _make_case(k1, N_NODES, N_EDGES, N_GRAPHS, FN, FE, FG, HID, TGT)
    x, edge_index, edge_attr, u, batch, params = case

    out = node_model_forward(x, edge_index, edge_attr, u, batch, params)
    out = jax.block_until_ready(out)
    ref = _ref_forward(x, edge_index, edge_attr, u, batch, params)
    assert out.shape == (N_NODES, TGT)
    # scatter matmul runs in bf16 (f32 accumulate) -> relaxed tolerance
    assert jnp.allclose(out, ref, atol=2e-2, rtol=2e-2)

    # ---- second case exercising multiple node tiles + segmented edge tiles ----
    case2 = _make_case(k2, 24, 300, N_GRAPHS, FN, FE, FG, HID, TGT)
    x2, ei2, ea2, u2, b2_, p2 = case2
    out2 = node_model_forward(x2, ei2, ea2, u2, b2_, p2, tile_e=128)
    out2 = jax.block_until_ready(out2)
    ref2 = _ref_forward(x2, ei2, ea2, u2, b2_, p2)
    assert out2.shape == (24, TGT)
    assert jnp.allclose(out2, ref2, atol=3e-2, rtol=3e-2)

    # TODO(synk): BatchNorm1d branch (use_batch_norm=True) not implemented; the
    # module default (use_batch_norm=False) is what this kernel reproduces.

    print("KERNEL_OK")
</pallas_src>

<mosaic_0001>
module attributes {stable_mosaic.version = 11 : i64} {
  func.func @node_model_kernel(%arg0: i32, %arg1: i32, %arg2: memref<1xi32, #tpu.memory_space<smem>>, %arg3: memref<1xi32, #tpu.memory_space<smem>>, %arg4: memref<8x4xf32, #tpu.memory_space<vmem>>, %arg5: memref<128x4xf32, #tpu.memory_space<vmem>>, %arg6: memref<1x128xi32, #tpu.memory_space<vmem>>, %arg7: memref<8x1xi32, #tpu.memory_space<vmem>>, %arg8: memref<4x128xf32, #tpu.memory_space<vmem>>, %arg9: memref<4x128xf32, #tpu.memory_space<vmem>>, %arg10: memref<2x128xf32, #tpu.memory_space<vmem>>, %arg11: memref<1x128xf32, #tpu.memory_space<vmem>>, %arg12: memref<128x128xf32, #tpu.memory_space<vmem>>, %arg13: memref<1x128xf32, #tpu.memory_space<vmem>>, %arg14: memref<128x128xf32, #tpu.memory_space<vmem>>, %arg15: memref<1x128xf32, #tpu.memory_space<vmem>>, %arg16: memref<8x128xf32, #tpu.memory_space<vmem>>, %arg17: memref<8x128xf32, #tpu.memory_space<vmem>>) attributes {dimension_semantics = [#tpu.dimension_semantics<parallel>, #tpu.dimension_semantics<arbitrary>], iteration_bounds = array<i64: 1, 1>, scalar_prefetch = 2 : i64, scratch_operands = 1 : i64, tpu.core_type = #tpu.core_type<tc>, window_params = [{transform_indices = @transform_0, window_bounds = array<i64: 8, 4>}, {transform_indices = @transform_1, window_bounds = array<i64: 128, 4>}, {transform_indices = @transform_2, window_bounds = array<i64: 1, 128>}, {transform_indices = @transform_3, window_bounds = array<i64: 8, 1>}, {pipeline_mode = #tpu.pipeline_mode<synchronous>, transform_indices = @transform_4, window_bounds = array<i64: 4, 128>}, {pipeline_mode = #tpu.pipeline_mode<synchronous>, transform_indices = @transform_5, window_bounds = array<i64: 4, 128>}, {pipeline_mode = #tpu.pipeline_mode<synchronous>, transform_indices = @transform_6, window_bounds = array<i64: 2, 128>}, {pipeline_mode = #tpu.pipeline_mode<synchronous>, transform_indices = @transform_7, window_bounds = array<i64: 1, 128>}, {pipeline_mode = #tpu.pipeline_mode<synchronous>, transform_indices = @transform_8, window_bounds = array<i64: 128, 128>}, {pipeline_mode = #tpu.pipeline_mode<synchronous>, transform_indices = @transform_9, window_bounds = array<i64: 1, 128>}, {pipeline_mode = #tpu.pipeline_mode<synchronous>, transform_indices = @transform_10, window_bounds = array<i64: 128, 128>}, {pipeline_mode = #tpu.pipeline_mode<synchronous>, transform_indices = @transform_11, window_bounds = array<i64: 1, 128>}, {transform_indices = @transform_12, window_bounds = array<i64: 8, 128>}]} {
    %c0_i32 = arith.constant 0 : i32
    %0 = arith.cmpi eq, %arg1, %c0_i32 : i32
    %1 = arith.extui %0 : i1 to i32
    %c0_i32_0 = arith.constant 0 : i32
    %2 = arith.cmpi ne, %1, %c0_i32_0 : i32
    scf.if %2 {
      %cst = arith.constant 0.000000e+00 : f32
      %11 = vector.broadcast %cst : f32 to vector<8x128xf32>
      %c0 = arith.constant 0 : index
      %c0_4 = arith.constant 0 : index
      %12 = vector.load %arg17[%c0, %c0_4] : memref<8x128xf32, #tpu.memory_space<vmem>>, vector<8x128xf32>
      tpu.vector_store %arg17[%c0, %c0_4], %11 {strides = array<i32>} : memref<8x128xf32, #tpu.memory_space<vmem>>, vector<8x128xf32>,
    } else {
    }
    %3 = arith.index_cast %arg0 : i32 to index
    %4 = memref.load %arg3[%3] : memref<1xi32, #tpu.memory_space<smem>>
    %5 = arith.cmpi slt, %arg1, %4 : i32
    %6 = arith.extui %5 : i1 to i32
    %c0_i32_1 = arith.constant 0 : i32
    %7 = arith.cmpi ne, %6, %c0_i32_1 : i32
    scf.if %7 {
      %c0 = arith.constant 0 : index
      %c0_4 = arith.constant 0 : index
      %11 = vector.load %arg5[%c0, %c0_4] : memref<128x4xf32, #tpu.memory_space<vmem>>, vector<128x4xf32>
      %c0_5 = arith.constant 0 : index
      %c0_6 = arith.constant 0 : index
      %12 = vector.load %arg9[%c0_5, %c0_6] : memref<4x128xf32, #tpu.memory_space<vmem>>, vector<4x128xf32>
      %cst = arith.constant dense<0.000000e+00> : vector<128x128xf32>
      %13 = tpu.matmul %11, %12, %cst {dimension_numbers = #tpu.dot_dimension_numbers<[1], [0], [0], [1], [0, 0, 1, 1], [], []>} : vector<128x4xf32>, vector<4x128xf32>, vector<128x128xf32> -> vector<128x128xf32>
      %14 = arith.truncf %13 : vector<128x128xf32> to vector<128x128xbf16>
      %c0_7 = arith.constant 0 : index
      %c0_8 = arith.constant 0 : index
      %15 = vector.load %arg6[%c0_7, %c0_8] : memref<1x128xi32, #tpu.memory_space<vmem>>, vector<1x128xi32>
      %c8_i32 = arith.constant 8 : i32
      %16 = arith.muli %arg0, %c8_i32 : i32
      %17 = vector.broadcast %16 : i32 to vector<1x128xi32>
      %18 = arith.subi %15, %17 : vector<1x128xi32>
      %19 = tpu.iota {dimensions = array<i32: 0>} : vector<8x1xi32>
      %20 = vector.broadcast %19 : vector<8x1xi32> to vector<8x128xi32>
      %21 = vector.broadcast %18 : vector<1x128xi32> to vector<8x128xi32>
      %22 = arith.cmpi eq, %20, %21 : vector<8x128xi32>
      %23 = arith.extui %22 : vector<8x128xi1> to vector<8x128xi32>
      %24 = arith.sitofp %23 : vector<8x128xi32> to vector<8x128xf32>
      %25 = arith.truncf %24 : vector<8x128xf32> to vector<8x128xbf16>
      %c0_9 = arith.constant 0 : index
      %c0_10 = arith.constant 0 : index
      %26 = vector.load %arg17[%c0_9, %c0_10] : memref<8x128xf32, #tpu.memory_space<vmem>>, vector<8x128xf32>
      %cst_11 = arith.constant dense<0.000000e+00> : vector<8x128xf32>
      %27 = tpu.matmul %25, %14, %cst_11 {dimension_numbers = #tpu.dot_dimension_numbers<[1], [0], [0], [1], [0, 0, 1, 1], [], []>} : vector<8x128xbf16>, vector<128x128xbf16>, vector<8x128xf32> -> vector<8x128xf32>
      %28 = arith.addf %26, %27 : vector<8x128xf32>
      %c0_12 = arith.constant 0 : index
      %c0_13 = arith.constant 0 : index
      %29 = vector.load %arg17[%c0_12, %c0_13] : memref<8x128xf32, #tpu.memory_space<vmem>>, vector<8x128xf32>
      tpu.vector_store %arg17[%c0_12, %c0_13], %28 {strides = array<i32>} : memref<8x128xf32, #tpu.memory_space<vmem>>, vector<8x128xf32>,
    } else {
    }
    %c0_i32_2 = arith.constant 0 : i32
    %8 = arith.cmpi eq, %arg1, %c0_i32_2 : i32
    %9 = arith.extui %8 : i1 to i32
    %c0_i32_3 = arith.constant 0 : i32
    %10 = arith.cmpi ne, %9, %c0_i32_3 : i32
    scf.if %10 {
      %c0 = arith.constant 0 : index
      %c0_4 = arith.constant 0 : index
      %11 = vector.load %arg7[%c0, %c0_4] : memref<8x1xi32, #tpu.memory_space<vmem>>, vector<8x1xi32>
      %12 = tpu.iota {dimensions = array<i32: 1>} : vector<8x2xi32>
      %13 = vector.broadcast %11 : vector<8x1xi32> to vector<8x2xi32>
      %14 = arith.cmpi eq, %13, %12 : vector<8x2xi32>
      %15 = arith.extui %14 : vector<8x2xi1> to vector<8x2xi32>
      %16 = arith.sitofp %15 : vector<8x2xi32> to vector<8x2xf32>
      %c0_5 = arith.constant 0 : index
      %c0_6 = arith.constant 0 : index
      %17 = vector.load %arg4[%c0_5, %c0_6] : memref<8x4xf32, #tpu.memory_space<vmem>>, vector<8x4xf32>
      %c0_7 = arith.constant 0 : index
      %c0_8 = arith.constant 0 : index
      %18 = vector.load %arg8[%c0_7, %c0_8] : memref<4x128xf32, #tpu.memory_space<vmem>>, vector<4x128xf32>
      %cst = arith.constant dense<0.000000e+00> : vector<8x128xf32>
      %19 = tpu.matmul %17, %18, %cst {dimension_numbers = #tpu.dot_dimension_numbers<[1], [0], [0], [1], [0, 0, 1, 1], [], []>} : vector<8x4xf32>, vector<4x128xf32>, vector<8x128xf32> -> vector<8x128xf32>
      %c0_9 = arith.constant 0 : index
      %c0_10 = arith.constant 0 : index
      %20 = vector.load %arg10[%c0_9, %c0_10] : memref<2x128xf32, #tpu.memory_space<vmem>>, vector<2x128xf32>
      %cst_11 = arith.constant dense<0.000000e+00> : vector<8x128xf32>
      %21 = tpu.matmul %16, %20, %cst_11 {dimension_numbers = #tpu.dot_dimension_numbers<[1], [0], [0], [1], [0, 0, 1, 1], [], []>} : vector<8x2xf32>, vector<2x128xf32>, vector<8x128xf32> -> vector<8x128xf32>
      %22 = arith.addf %19, %21 : vector<8x128xf32>
      %c0_12 = arith.constant 0 : index
      %c0_13 = arith.constant 0 : index
      %23 = vector.load %arg17[%c0_12, %c0_13] : memref<8x128xf32, #tpu.memory_space<vmem>>, vector<8x128xf32>
      %24 = arith.addf %22, %23 : vector<8x128xf32>
      %c0_14 = arith.constant 0 : index
      %c0_15 = arith.constant 0 : index
      %25 = vector.load %arg11[%c0_14, %c0_15] : memref<1x128xf32, #tpu.memory_space<vmem>>, vector<1x128xf32>
      %26 = vector.broadcast %25 : vector<1x128xf32> to vector<8x128xf32>
      %27 = arith.addf %24, %26 : vector<8x128xf32>
      %cst_16 = arith.constant 0.000000e+00 : f32
      %28 = vector.broadcast %cst_16 : f32 to vector<8x128xf32>
      %29 = arith.cmpf ogt, %27, %28 : vector<8x128xf32>
      %cst_17 = arith.constant 0.00999999977 : f32
      %30 = vector.broadcast %cst_17 : f32 to vector<8x128xf32>
      %31 = arith.mulf %30, %27 : vector<8x128xf32>
      %32 = arith.select %29, %27, %31 : vector<8x128xi1>, vector<8x128xf32>
      %c0_18 = arith.constant 0 : index
      %c0_19 = arith.constant 0 : index
      %33 = vector.load %arg12[%c0_18, %c0_19] : memref<128x128xf32, #tpu.memory_space<vmem>>, vector<128x128xf32>
      %cst_20 = arith.constant dense<0.000000e+00> : vector<8x128xf32>
      %34 = tpu.matmul %32, %33, %cst_20 {dimension_numbers = #tpu.dot_dimension_numbers<[1], [0], [0], [1], [0, 0, 1, 1], [], []>} : vector<8x128xf32>, vector<128x128xf32>, vector<8x128xf32> -> vector<8x128xf32>
      %c0_21 = arith.constant 0 : index
      %c0_22 = arith.constant 0 : index
      %35 = vector.load %arg13[%c0_21, %c0_22] : memref<1x128xf32, #tpu.memory_space<vmem>>, vector<1x128xf32>
      %36 = vector.broadcast %35 : vector<1x128xf32> to vector<8x128xf32>
      %37 = arith.addf %34, %36 : vector<8x128xf32>
      %cst_23 = arith.constant 0.000000e+00 : f32
      %38 = vector.broadcast %cst_23 : f32 to vector<8x128xf32>
      %39 = arith.cmpf ogt, %37, %38 : vector<8x128xf32>
      %cst_24 = arith.constant 0.00999999977 : f32
      %40 = vector.broadcast %cst_24 : f32 to vector<8x128xf32>
      %41 = arith.mulf %40, %37 : vector<8x128xf32>
      %42 = arith.select %39, %37, %41 : vector<8x128xi1>, vector<8x128xf32>
      %c0_25 = arith.constant 0 : index
      %c0_26 = arith.constant 0 : index
      %43 = vector.load %arg14[%c0_25, %c0_26] : memref<128x128xf32, #tpu.memory_space<vmem>>, vector<128x128xf32>
      %cst_27 = arith.constant dense<0.000000e+00> : vector<8x128xf32>
      %44 = tpu.matmul %42, %43, %cst_27 {dimension_numbers = #tpu.dot_dimension_numbers<[1], [0], [0], [1], [0, 0, 1, 1], [], []>} : vector<8x128xf32>, vector<128x128xf32>, vector<8x128xf32> -> vector<8x128xf32>
      %c0_28 = arith.constant 0 : index
      %c0_29 = arith.constant 0 : index
      %45 = vector.load %arg15[%c0_28, %c0_29] : memref<1x128xf32, #tpu.memory_space<vmem>>, vector<1x128xf32>
      %46 = vector.broadcast %45 : vector<1x128xf32> to vector<8x128xf32>
      %47 = arith.addf %44, %46 : vector<8x128xf32>
      %c0_30 = arith.constant 0 : index
      %c0_31 = arith.constant 0 : index
      %48 = vector.load %arg16[%c0_30, %c0_31] : memref<8x128xf32, #tpu.memory_space<vmem>>, vector<8x128xf32>
      tpu.vector_store %arg16[%c0_30, %c0_31], %47 {strides = array<i32>} : memref<8x128xf32, #tpu.memory_space<vmem>>, vector<8x128xf32>,
    } else {
    }
    return
  }
  func.func @transform_0(%arg0: i32, %arg1: i32, %arg2: memref<1xi32, #tpu.memory_space<smem>>, %arg3: memref<1xi32, #tpu.memory_space<smem>>) -> (i32, i32) {
    %c0_i32 = arith.constant 0 : i32
    %c0_i32_0 = arith.constant 0 : i32
    return %arg0, %c0_i32 : i32, i32
  }
  func.func @transform_1(%arg0: i32, %arg1: i32, %arg2: memref<1xi32, #tpu.memory_space<smem>>, %arg3: memref<1xi32, #tpu.memory_space<smem>>) -> (i32, i32) {
    %0 = arith.index_cast %arg0 : i32 to index
    %1 = memref.load %arg2[%0] : memref<1xi32, #tpu.memory_space<smem>>
    %2 = arith.addi %1, %arg1 : i32
    %c0_i32 = arith.constant 0 : i32
    %c0_i32_0 = arith.constant 0 : i32
    return %2, %c0_i32 : i32, i32
  }
  func.func @transform_2(%arg0: i32, %arg1: i32, %arg2: memref<1xi32, #tpu.memory_space<smem>>, %arg3: memref<1xi32, #tpu.memory_space<smem>>) -> (i32, i32) {
    %0 = arith.index_cast %arg0 : i32 to index
    %1 = memref.load %arg2[%0] : memref<1xi32, #tpu.memory_space<smem>>
    %2 = arith.addi %1, %arg1 : i32
    %c0_i32 = arith.constant 0 : i32
    %c0_i32_0 = arith.constant 0 : i32
    return %c0_i32, %2 : i32, i32
  }
  func.func @transform_3(%arg0: i32, %arg1: i32, %arg2: memref<1xi32, #tpu.memory_space<smem>>, %arg3: memref<1xi32, #tpu.memory_space<smem>>) -> (i32, i32) {
    %c0_i32 = arith.constant 0 : i32
    %c0_i32_0 = arith.constant 0 : i32
    return %arg0, %c0_i32 : i32, i32
  }
  func.func @transform_4(%arg0: i32, %arg1: i32, %arg2: memref<1xi32, #tpu.memory_space<smem>>, %arg3: memref<1xi32, #tpu.memory_space<smem>>) -> (i32, i32) {
    %c0_i32 = arith.constant 0 : i32
    %c0_i32_0 = arith.constant 0 : i32
    %c0_i32_1 = arith.constant 0 : i32
    return %c0_i32, %c0_i32_0 : i32, i32
  }
  func.func @transform_5(%arg0: i32, %arg1: i32, %arg2: memref<1xi32, #tpu.memory_space<smem>>, %arg3: memref<1xi32, #tpu.memory_space<smem>>) -> (i32, i32) {
    %c0_i32 = arith.constant 0 : i32
    %c0_i32_0 = arith.constant 0 : i32
    %c0_i32_1 = arith.constant 0 : i32
    return %c0_i32, %c0_i32_0 : i32, i32
  }
  func.func @transform_6(%arg0: i32, %arg1: i32, %arg2: memref<1xi32, #tpu.memory_space<smem>>, %arg3: memref<1xi32, #tpu.memory_space<smem>>) -> (i32, i32) {
    %c0_i32 = arith.constant 0 : i32
    %c0_i32_0 = arith.constant 0 : i32
    %c0_i32_1 = arith.constant 0 : i32
    return %c0_i32, %c0_i32_0 : i32, i32
  }
  func.func @transform_7(%arg0: i32, %arg1: i32, %arg2: memref<1xi32, #tpu.memory_space<smem>>, %arg3: memref<1xi32, #tpu.memory_space<smem>>) -> (i32, i32) {
    %c0_i32 = arith.constant 0 : i32
    %c0_i32_0 = arith.constant 0 : i32
    %c0_i32_1 = arith.constant 0 : i32
    return %c0_i32, %c0_i32_0 : i32, i32
  }
  func.func @transform_8(%arg0: i32, %arg1: i32, %arg2: memref<1xi32, #tpu.memory_space<smem>>, %arg3: memref<1xi32, #tpu.memory_space<smem>>) -> (i32, i32) {
    %c0_i32 = arith.constant 0 : i32
    %c0_i32_0 = arith.constant 0 : i32
    %c0_i32_1 = arith.constant 0 : i32
    return %c0_i32, %c0_i32_0 : i32, i32
  }
  func.func @transform_9(%arg0: i32, %arg1: i32, %arg2: memref<1xi32, #tpu.memory_space<smem>>, %arg3: memref<1xi32, #tpu.memory_space<smem>>) -> (i32, i32) {
    %c0_i32 = arith.constant 0 : i32
    %c0_i32_0 = arith.constant 0 : i32
    %c0_i32_1 = arith.constant 0 : i32
    return %c0_i32, %c0_i32_0 : i32, i32
  }
  func.func @transform_10(%arg0: i32, %arg1: i32, %arg2: memref<1xi32, #tpu.memory_space<smem>>, %arg3: memref<1xi32, #tpu.memory_space<smem>>) -> (i32, i32) {
    %c0_i32 = arith.constant 0 : i32
    %c0_i32_0 = arith.constant 0 : i32
    %c0_i32_1 = arith.constant 0 : i32
    return %c0_i32, %c0_i32_0 : i32, i32
  }
  func.func @transform_11(%arg0: i32, %arg1: i32, %arg2: memref<1xi32, #tpu.memory_space<smem>>, %arg3: memref<1xi32, #tpu.memory_space<smem>>) -> (i32, i32) {
    %c0_i32 = arith.constant 0 : i32
    %c0_i32_0 = arith.constant 0 : i32
    %c0_i32_1 = arith.constant 0 : i32
    return %c0_i32, %c0_i32_0 : i32, i32
  }
  func.func @transform_12(%arg0: i32, %arg1: i32, %arg2: memref<1xi32, #tpu.memory_space<smem>>, %arg3: memref<1xi32, #tpu.memory_space<smem>>) -> (i32, i32) {
    %c0_i32 = arith.constant 0 : i32
    %c0_i32_0 = arith.constant 0 : i32
    return %arg0, %c0_i32 : i32, i32
  }
}

</mosaic_0001>

<bundles_post_ra>
// kernel: tpu_custom_call.1
= control target key start
LH: loop header
LB: loop body
LE: loop exit
PB: predicated region body
PF: predicated region fallthrough
CT: control target
= control target key end

     0   :  { %21 = vsyncpa [#allocation7], 0  ;;  %s1340_s0 = inlined_call_operand.<no memory space> [shape: s32[1], index: 0, kind: input, shape index: {}]   ;;  %s1341_s1 = inlined_call_operand.<no memory space> [shape: s32[1], index: 1, kind: input, shape index: {}]   ;;  %s1342_s2 = inlined_call_operand.vmem [shape: f32[8,4], index: 2, kind: input, shape index: {}]   ;;  %s1343_s3 = inlined_call_operand.vmem [shape: f32[128,4], index: 3, kind: input, shape index: {}]   ;;  %s1344_s4 = inlined_call_operand.vmem [shape: s32[1,128], index: 4, kind: input, shape index: {}]   ;;  %s1345_s5 = inlined_call_operand.vmem [shape: s32[8,1], index: 5, kind: input, shape index: {}]   ;;  %s1346_s6 = inlined_call_operand.vmem [shape: f32[4,128], index: 6, kind: input, shape index: {}]   ;;  %s1347_s7 = inlined_call_operand.vmem [shape: f32[4,128], index: 7, kind: input, shape index: {}]   ;;  %s1348_s8 = inlined_call_operand.vmem [shape: f32[2,128], index: 8, kind: input, shape index: {}]   ;;  %s1349_s9 = inlined_call_operand.vmem [shape: f32[1,128], index: 9, kind: input, shape index: {}]   ;;  %s1350_s10 = inlined_call_operand.vmem [shape: f32[128,128], index: 10, kind: input, shape index: {}]   ;;  %s1351_s11 = inlined_call_operand.vmem [shape: f32[1,128], index: 11, kind: input, shape index: {}]   ;;  %s1352_s12 = inlined_call_operand.hbm [shape: f32[128,128], index: 12, kind: input, shape index: {}]   ;;  %s1353_s13 = inlined_call_operand.vmem [shape: f32[1,128], index: 13, kind: input, shape index: {}]   ;;  %s1354_s14 = inlined_call_operand.hbm [shape: f32[8,128], index: 14, kind: output, shape index: {}]  }
   0x1   :  { %22 = vsyncpa [#allocation8], 0  ;;  %s1073_s29 = smov [#allocation6]  }
   0x2   :  { %s65_s30 = sshll.u32 %s1073_s29, 4  ;;  %s66_s30 = int_to_ptr.vmem [resolvable:$true] %s65_s30 }
   0x3   :  { %s1037_s15 = scalar_lea.vmem %s66_s30, 2048  ;;  %p1042_p1 = scmp.lt.s32.totalorder %s66_s30, %s66_s30 }
   0x4   :  { %p1038_p0 = scmp.ne.s32.totalorder %s66_s30, %s1037_s15  ;;  %p1043_p2 = scmp.lt.s32.totalorder %s1037_s15, %s1037_s15 }
   0x6   :  { %p1044_p3 = por %p1043_p2, %p1042_p1 }
   0x8   :  { %p1045_p4 = pnand %p1044_p3, %p1038_p0 }
   0xa   :  { %1048 = shalt.err (!%p1045_p4)
}
   0xb   :  { %s1074_s16 = smov 128   ;;  %s1075_s17 = smov 8  }
   0xc   :  { %71 = dma.hbm_to_vmem [thread:$0]  %s1352_s12, 2048, %s66_s30, [#allocation7], %s1074_s16, %s1074_s16, %s1075_s17  }
   0xd   :  { %1069 = dma.done.wait [#allocation7], 2048  }
   0xe   :  { %1070 = vsyncadd [#allocation7], 4294965248  ;;  %s795_s22 = sshll.u32 %s1340_s0, 4  ;;  %p101_p5 = scmp.lt.s32.totalorder %s1340_s0, 0  ;;  %v1076_v0 = vmov 0.0  }
   0xf   :  { %p92_p6 = scmp.lt.s32.totalorder %s795_s22, 15  ;;  %111 = vst [vmem:[#allocation2] sm:$0xff] %v1076_v0  ;;  %p798_p7 = scmp.le.s32.totalorder %s1341_s1, 0 }
  0x10   :  { %s1356_s0 = smov (!%p101_p5, %s1340_s0), 0 }
  0x11   :  { %s1358_s22 = smov (!%p92_p6, %s795_s22), 15  ;;  %s103_s28 = scalar_lea.vmem %s1344_s4, %s1356_s0 }
  0x12   :  { %s796_s29 = sshll.u32 %s1358_s22, 3  ;;  %116 = sbr.rel (%p798_p7) target bundleno = 481 (0x1e1), region = 61 }
  0x13   :  { %s1180_s16 = scalar_lea.vmem %s1343_s3, %s796_s29 }
  0x17   :  { %v133_v1 = vld [vmem:[%s1347_s7] sm:$0xf]  ;;  %vm183_vm0 = vcmask 1043456   ;;  %vm134_vm1 = vcmask 31744   ;;  %v118_v3 = vld [vmem:[%s1180_s16 + $0x8] sm:$0xff]  ;;  %v119_v4 = vld [vmem:[%s1180_s16 + $0x10] sm:$0xff]  ;;  %v344_v40 = vlaneseq }
  0x18   :  { %v117_v2 = vld [vmem:[%s1180_s16] sm:$0xff]  ;;  %892 = vmatprep.subr.msk.mxu0 %vm183_vm0, %v133_v1  ;;  %v120_v5 = vld [vmem:[%s1180_s16 + $0x18] sm:$0xff]  ;;  %v122_v7 = vld [vmem:[%s1180_s16 + $0x28] sm:$0xff]  ;;  %v1077_v18 = vmov 0.0   ;;  %vm1078_vm2 = vmmov 0  }
  0x19   :  { %894 = vmatprep.mubr.msk.f32.mxu0 %vm134_vm1, %v117_v2  ;;  %893 = vmatpush3.msk.msra.mxu0 %vm183_vm0, %v133_v1  ;;  %v121_v6 = vld [vmem:[%s1180_s16 + $0x20] sm:$0xff]  ;;  %v123_v8 = vld [vmem:[%s1180_s16 + $0x30] sm:$0xff]  ;;  %v124_v9 = vld [vmem:[%s1180_s16 + $0x38] sm:$0xff]  ;;  %v345_v42 = vshrl.u32 %v344_v40, 7  ;;  %v1079_v46 = vmov 1.0|1.0  }
  0x1a   :  { %895 = vmatmul.mubr.msk.f32.vlgmr.msra.gmra.mxu0 %vm134_vm1, %v118_v3  ;;  %v125_v10 = vld [vmem:[%s1180_s16 + $0x40] sm:$0xff]  ;;  %v126_v11 = vld [vmem:[%s1180_s16 + $0x48] sm:$0xff]  ;;  %v127_v12 = vld [vmem:[%s1180_s16 + $0x50] sm:$0xff]  ;;  %918 = vmatprep.subr.bf16.mxu1 %v1077_v18 }
  0x1b   :  { %897 = vmatprep.mubr.msk.f32.mxu0 %vm134_vm1, %v119_v4  ;;  %v128_v13 = vld [vmem:[%s1180_s16 + $0x58] sm:$0xff]  ;;  %v129_v14 = vld [vmem:[%s1180_s16 + $0x60] sm:$0xff]  ;;  %v130_v15 = vld [vmem:[%s1180_s16 + $0x68] sm:$0xff]  ;;  %934 = vmatprep.mubr.msk.bf16.mxu1 %vm1078_vm2, %v1077_v18 }
  0x1c   :  { %v131_v16 = vld [vmem:[%s1180_s16 + $0x70] sm:$0xff]  ;;  %v132_v17 = vld [vmem:[%s1180_s16 + $0x78] sm:$0xff]  ;;  %v816_v44 = vld [vmem:[%s103_s28] ss:$0 sm:$0xff] }
  0x1d   :  { %vm350_vm3 = vcmp.eq.s32.totalorder %v345_v42, %v816_v44  ;;  %v354_v47 = vld [vmem:[#allocation2] sm:$0xff] }
  0x1e   :  { %898 = vmatmul.mubr.msk.f32.gmra.mxu0 %vm134_vm1, %v120_v5  ;;  %vm818_vm4 = vmpackc.low %vm350_vm3, %vm350_vm3 }
  0x1f   :  { %900 = vmatprep.mubr.msk.f32.mxu0 %vm134_vm1, %v121_v6 }
  0x22   :  { %901 = vmatmul.mubr.msk.f32.gmra.mxu0 %vm134_vm1, %v122_v7 }
  0x23   :  { %903 = vmatprep.mubr.msk.f32.mxu0 %vm134_vm1, %v123_v8 }
  0x26   :  { %904 = vmatmul.mubr.msk.f32.gmra.mxu0 %vm134_vm1, %v124_v9 }
  0x27   :  { %906 = vmatprep.mubr.msk.f32.mxu0 %vm134_vm1, %v125_v10 }
  0x2a   :  { %907 = vmatmul.mubr.msk.f32.gmra.mxu0 %vm134_vm1, %v126_v11 }
  0x2b   :  { %909 = vmatprep.mubr.msk.f32.mxu0 %vm134_vm1, %v127_v12 }
  0x2e   :  { %910 = vmatmul.mubr.msk.f32.gmra.mxu0 %vm134_vm1, %v128_v13 }
  0x2f   :  { %912 = vmatprep.mubr.msk.f32.mxu0 %vm134_vm1, %v129_v14 }
  0x32   :  { %913 = vmatmul.mubr.msk.f32.gmra.mxu0 %vm134_vm1, %v130_v15 }
  0x33   :  { %915 = vmatprep.mubr.msk.f32.mxu0 %vm134_vm1, %v131_v16 }
  0x36   :  { %916 = vmatmul.mubr.msk.f32.gmra.mxu0 %vm134_vm1, %v132_v17 }
  0xda   :  { %v896_v19 = vpop.f32.mrf.mxu0 }
  0xdc   :  { %v253_v20 = vpop.f32.mrf.mxu0 }
  0xdd   :  { %v332_v45 = vpack.c.bf16 %v896_v19, %v253_v20 }
  0xde   :  { %v899_v21 = vpop.f32.mrf.mxu0 }
  0xe0   :  { %v263_v22 = vpop.f32.mrf.mxu0 }
  0xe1   :  { %v333_v43 = vpack.c.bf16 %v899_v21, %v263_v22 }
  0xe2   :  { %v902_v23 = vpop.f32.mrf.mxu0 }
  0xe4   :  { %v273_v24 = vpop.f32.mrf.mxu0 }
  0xe5   :  { %v334_v41 = vpack.c.bf16 %v902_v23, %v273_v24 }
  0xe6   :  { %v905_v25 = vpop.f32.mrf.mxu0 }
  0xe8   :  { %v283_v26 = vpop.f32.mrf.mxu0 }
  0xe9   :  { %v335_v39 = vpack.c.bf16 %v905_v25, %v283_v26 }
  0xea   :  { %v908_v27 = vpop.f32.mrf.mxu0 }
  0xec   :  { %v293_v28 = vpop.f32.mrf.mxu0 }
  0xed   :  { %v336_v38 = vpack.c.bf16 %v908_v27, %v293_v28 }
  0xee   :  { %v911_v29 = vpop.f32.mrf.mxu0 }
  0xf0   :  { %v303_v30 = vpop.f32.mrf.mxu0 }
  0xf1   :  { %v337_v37 = vpack.c.bf16 %v911_v29, %v303_v30 }
  0xf2   :  { %v914_v31 = vpop.f32.mrf.mxu0 }
  0xf4   :  { %v313_v32 = vpop.f32.mrf.mxu0 }
  0xf5   :  { %v338_v36 = vpack.c.bf16 %v914_v31, %v313_v32 }
  0xf6   :  { %v917_v33 = vpop.f32.mrf.mxu0 }
  0xf8   :  { %v323_v34 = vpop.f32.mrf.mxu0 }
  0xf9   :  { %v339_v35 = vpack.c.bf16 %v917_v33, %v323_v34 }
  0xfb   :  { %919 = vmatpush3.bf16.msra.mxu1 %v339_v35 }
  0xfc   :  { %920 = vmatprep.subr.bf16.mxu1 %v1077_v18 }
  0xff   :  { %921 = vmatpush3.bf16.msra.mxu1 %v338_v36 }
 0x100   :  { %922 = vmatprep.subr.bf16.mxu1 %v1077_v18 }
 0x103   :  { %923 = vmatpush3.bf16.msra.mxu1 %v337_v37 }
 0x104   :  { %924 = vmatprep.subr.bf16.mxu1 %v1077_v18 }
 0x107   :  { %925 = vmatpush3.bf16.msra.mxu1 %v336_v38 }
 0x108   :  { %926 = vmatprep.subr.bf16.mxu1 %v1077_v18 }
 0x10b   :  { %927 = vmatpush3.bf16.msra.mxu1 %v335_v39 }
 0x10c   :  { %928 = vmatprep.subr.bf16.mxu1 %v1077_v18 }
 0x10f   :  { %929 = vmatpush3.bf16.msra.mxu1 %v334_v41 }
 0x110   :  { %930 = vmatprep.subr.bf16.mxu1 %v1077_v18 }
 0x113   :  { %931 = vmatpush3.bf16.msra.mxu1 %v333_v43 }
 0x114   :  { %932 = vmatprep.subr.bf16.mxu1 %v1077_v18 }
 0x117   :  { %933 = vmatpush3.bf16.msra.mxu1 %v332_v45 }
 0x11a   :  { %935 = vmatmul.mubr.msk.bf16.vlgmr.msra.gmra.mxu1 %vm818_vm4, %v1079_v46 }
 0x1da   :  { %v389_v48 = vpop.f32.mrf.mxu1 }
 0x1db   :  { %v395_v49 = vadd.f32 %v389_v48, %v354_v47 }
 0x1dc   :  { %v936_v50 = vpop.f32.mrf.mxu1 }
 0x1dd   :  { %396 = vst [vmem:[#allocation2] sm:$0xff] %v395_v49 }
 0x1de   :  { %v392_v51 = vpop.f32.mrf.mxu1 }
 0x1e0   :  { %v937_v52 = vpop.f32.mrf.mxu1 }
 0x1e1 PF:  { %v400_v53 = vld [vmem:[%s1345_s5] sm:$0xff]  ;;  %943 = vmatprep.subr.mxu1 %v1076_v0  ;;  %vm494_vm5 = vcmask 1043456   ;;  %938 = vmatprep.subr.mxu0 %v1076_v0  ;;  %v1080_v55 = vmov 0   ;;  %vm490_vm6 = vcmask 31744   ;;  %vm416_vm7 = vcmask 1041408   ;;  %v596_v61 = vld [vmem:[%s1350_s10 + $0x78] sm:$0xff] }
 0x1e2   :  { %v410_v54 = vld [vmem:[%s1346_s6] sm:$0xf]  ;;  %1028 = vset.pattern.permute.xlu0 %v1080_v55  ;;  %vm1081_vm8 = vmmov 0   ;;  %v401_v58 = vlaneseq  ;;  %vm412_vm9 = vcmask 15360   ;;  %v595_v63 = vld [vmem:[%s1350_s10 + $0x70] sm:$0xff]  ;;  %v594_v1 = vld [vmem:[%s1350_s10 + $0x68] sm:$0xff] }
 0x1e3   :  { %944 = vmatpush3.msk.msra.mxu1 %vm494_vm5, %v410_v54  ;;  %v409_v56 = vld [vmem:[%s1342_s2] sm:$0xff]  ;;  %404 = vperm.xlu0 %1028, %v400_v53   ;;  %v592_v3 = vld [vmem:[%s1350_s10 + $0x58] sm:$0xff]  ;;  %v591_v4 = vld [vmem:[%s1350_s10 + $0x50] sm:$0xff]  ;;  %s1082_s15 = smov [#allocation9]  }
 0x1e4   :  { %v411_v57 = vld [vmem:[%s1348_s8] sm:$0x3]  ;;  %945 = vmatprep.mubr.msk.f32.mxu1 %vm1081_vm8, %v1076_v0  ;;  %940 = vmatprep.mubr.msk.f32.mxu0 %vm1081_vm8, %v1076_v0  ;;  %v402_v59 = vand.u32 127, %v401_v58  ;;  %v590_v5 = vld [vmem:[%s1350_s10 + $0x48] sm:$0xff]  ;;  %v588_v7 = vld [vmem:[%s1350_s10 + $0x38] sm:$0xff]  ;;  %s777_s16 = sshll.u32 %s1082_s15, 4  ;;  %s778_s16 = int_to_ptr.vmem [resolvable:$true] %s777_s16 }
 0x1e5   :  { %946 = vmatmul.mubr.msk.f32.vlgmr.msra.gmra.mxu1 %vm490_vm6, %v409_v56  ;;  %939 = vmatpush3.msk.msra.mxu0 %vm416_vm7, %v411_v57  ;;  %v593_v2 = vld [vmem:[%s1350_s10 + $0x60] sm:$0xff]  ;;  %v587_v8 = vld [vmem:[%s1350_s10 + $0x30] sm:$0xff]  ;;  %v586_v9 = vld [vmem:[%s1350_s10 + $0x28] sm:$0xff]  ;;  %s1049_s17 = scalar_lea.vmem %s778_s16, 128  ;;  %p1054_p9 = scmp.lt.s32.totalorder %s778_s16, %s778_s16 }
 0x1e6   :  { %948 = vmatprep.subr.mxu0 %v1076_v0  ;;  %983 = vmatprep.subr.mxu1 %v1076_v0  ;;  %v589_v6 = vld [vmem:[%s1350_s10 + $0x40] sm:$0xff]  ;;  %v584_v11 = vld [vmem:[%s1350_s10 + $0x18] sm:$0xff]  ;;  %v583_v13 = vld [vmem:[%s1350_s10 + $0x10] sm:$0xff]  ;;  %p1050_p8 = scmp.ne.s32.totalorder %s778_s16, %s1049_s17  ;;  %p1055_p10 = scmp.lt.s32.totalorder %s1049_s17, %s1049_s17 }
 0x1e7   :  { %1015 = vmatprep.mubr.msk.f32.mxu1 %vm1081_vm8, %v1076_v0  ;;  %v585_v10 = vld [vmem:[%s1350_s10 + $0x20] sm:$0xff]  ;;  %v582_v15 = vld [vmem:[%s1350_s10 + $0x8] sm:$0xff]  ;;  %v691_v18 = vld [vmem:[#allocation6 + $0x70] sm:$0xff] }
 0x1e8   :  { %v581_v16 = vld [vmem:[%s1350_s10] sm:$0xff]  ;;  %v690_v19 = vld [vmem:[#allocation6 + $0x68] sm:$0xff]  ;;  %v689_v20 = vld [vmem:[#allocation6 + $0x60] sm:$0xff]  ;;  %p1056_p11 = por %p1055_p10, %p1054_p9 }
 0x1e9   :  { %v692_v17 = vld [vmem:[#allocation6 + $0x78] sm:$0xff]  ;;  %v687_v22 = vld [vmem:[#allocation6 + $0x50] sm:$0xff]  ;;  %v686_v23 = vld [vmem:[#allocation6 + $0x48] sm:$0xff] }
 0x1ea   :  { %984 = vmatpush3.msra.mxu1 %v692_v17  ;;  %v688_v21 = vld [vmem:[#allocation6 + $0x58] sm:$0xff]  ;;  %v685_v24 = vld [vmem:[#allocation6 + $0x40] sm:$0xff]  ;;  %v683_v26 = vld [vmem:[#allocation6 + $0x30] sm:$0xff]  ;;  %p1057_p12 = pnand %p1056_p11, %p1050_p8 }
 0x1eb   :  { %985 = vmatprep.subr.mxu1 %v1076_v0  ;;  %v684_v25 = vld [vmem:[#allocation6 + $0x38] sm:$0xff]  ;;  %v682_v27 = vld [vmem:[#allocation6 + $0x28] sm:$0xff]  ;;  %v681_v28 = vld [vmem:[#allocation6 + $0x20] sm:$0xff] }
 0x1ec   :  { %986 = vmatpush3.msra.mxu1 %v691_v18  ;;  %v680_v29 = vld [vmem:[#allocation6 + $0x18] sm:$0xff]  ;;  %v679_v39 = vld [vmem:[#allocation6 + $0x10] sm:$0xff]  ;;  %v678_v40 = vld [vmem:[#allocation6 + $0x8] sm:$0xff] }
 0x1ed   :  { %987 = vmatprep.subr.mxu1 %v1076_v0  ;;  %v568_v31 = vld [vmem:[#allocation2] sm:$0xff]  ;;  %v677_v41 = vld [vmem:[#allocation6] sm:$0xff] }
 0x1ee   :  { %988 = vmatpush3.msra.mxu1 %v690_v19  ;;  %v825_v33 = vld [vmem:[%s1349_s9] ss:$0 sm:$0xff] }
 0x1ef   :  { %989 = vmatprep.subr.mxu1 %v1076_v0  ;;  %v826_v42 = vld [vmem:[%s1351_s11] ss:$0 sm:$0xff] }
 0x1f0   :  { %990 = vmatpush3.msra.mxu1 %v689_v20  ;;  %v827_v48 = vld [vmem:[%s1353_s13] ss:$0 sm:$0xff] }
 0x1f1   :  { %991 = vmatprep.subr.mxu1 %v1076_v0 }
 0x1f2   :  { %992 = vmatpush3.msra.mxu1 %v688_v21 }
 0x1f3   :  { %993 = vmatprep.subr.mxu1 %v1076_v0 }
 0x1f4   :  { %994 = vmatpush3.msra.mxu1 %v687_v22 }
 0x1f5   :  { %995 = vmatprep.subr.mxu1 %v1076_v0 }
 0x1f6   :  { %996 = vmatpush3.msra.mxu1 %v686_v23 }
 0x1f7   :  { %997 = vmatprep.subr.mxu1 %v1076_v0 }
 0x1f8   :  { %998 = vmatpush3.msra.mxu1 %v685_v24 }
 0x1f9   :  { %999 = vmatprep.subr.mxu1 %v1076_v0 }
 0x1fa   :  { %1000 = vmatpush3.msra.mxu1 %v684_v25 }
 0x1fb   :  { %1001 = vmatprep.subr.mxu1 %v1076_v0 }
 0x1fc   :  { %1002 = vmatpush3.msra.mxu1 %v683_v26 }
 0x1fd   :  { %1003 = vmatprep.subr.mxu1 %v1076_v0 }
 0x1fe   :  { %1004 = vmatpush3.msra.mxu1 %v682_v27 }
 0x1ff   :  { %1005 = vmatprep.subr.mxu1 %v1076_v0 }
 0x200   :  { %1006 = vmatpush3.msra.mxu1 %v681_v28 }
 0x201   :  { %1007 = vmatprep.subr.mxu1 %v1076_v0 }
 0x202   :  { %1008 = vmatpush3.msra.mxu1 %v680_v29 }
 0x203   :  { %1009 = vmatprep.subr.mxu1 %v1076_v0 }
 0x204   :  { %1010 = vmatpush3.msra.mxu1 %v679_v39 }
 0x205   :  { %1011 = vmatprep.subr.mxu1 %v1076_v0 }
 0x206   :  { %1012 = vmatpush3.msra.mxu1 %v678_v40 }
 0x207   :  { %1013 = vmatprep.subr.mxu1 %v1076_v0 }
 0x208   :  { %1014 = vmatpush3.msra.mxu1 %v677_v41 }
 0x25e   :  { %v405_v60 = vpop.permute.xlu0 %404 }
 0x25f   :  { %vm406_vm10 = vcmp.eq.s32.totalorder %v405_v60, %v402_v59 }
 0x260   :  { %v820_v62 = vsel %vm406_vm10, 1.0, %v1076_v0 }
 0x261   :  { %941 = vmatmul.mubr.msk.f32.vlgmr.msra.gmra.mxu0 %vm412_vm9, %v820_v62 }
 0x262   :  { %949 = vmatpush3.msra.mxu0 %v596_v61  ;;  %980 = vmatprep.mubr.msk.f32.mxu0 %vm1081_vm8, %v1076_v0 }
 0x263   :  { %950 = vmatprep.subr.mxu0 %v1076_v0 }
 0x264   :  { %951 = vmatpush3.msra.mxu0 %v595_v63 }
 0x265   :  { %952 = vmatprep.subr.mxu0 %v1076_v0 }
 0x266   :  { %953 = vmatpush3.msra.mxu0 %v594_v1 }
 0x267   :  { %954 = vmatprep.subr.mxu0 %v1076_v0 }
 0x268   :  { %955 = vmatpush3.msra.mxu0 %v593_v2 }
 0x269   :  { %956 = vmatprep.subr.mxu0 %v1076_v0 }
 0x26a   :  { %957 = vmatpush3.msra.mxu0 %v592_v3 }
 0x26b   :  { %958 = vmatprep.subr.mxu0 %v1076_v0 }
 0x26c   :  { %959 = vmatpush3.msra.mxu0 %v591_v4 }
 0x26d   :  { %960 = vmatprep.subr.mxu0 %v1076_v0 }
 0x26e   :  { %961 = vmatpush3.msra.mxu0 %v590_v5 }
 0x26f   :  { %962 = vmatprep.subr.mxu0 %v1076_v0 }
 0x270   :  { %963 = vmatpush3.msra.mxu0 %v589_v6 }
 0x271   :  { %964 = vmatprep.subr.mxu0 %v1076_v0 }
 0x272   :  { %965 = vmatpush3.msra.mxu0 %v588_v7 }
 0x273   :  { %966 = vmatprep.subr.mxu0 %v1076_v0 }
 0x274   :  { %967 = vmatpush3.msra.mxu0 %v587_v8 }
 0x275   :  { %968 = vmatprep.subr.mxu0 %v1076_v0 }
 0x276   :  { %969 = vmatpush3.msra.mxu0 %v586_v9 }
 0x277   :  { %970 = vmatprep.subr.mxu0 %v1076_v0 }
 0x278   :  { %971 = vmatpush3.msra.mxu0 %v585_v10 }
 0x279   :  { %972 = vmatprep.subr.mxu0 %v1076_v0 }
 0x27a   :  { %973 = vmatpush3.msra.mxu0 %v584_v11 }
 0x27b   :  { %974 = vmatprep.subr.mxu0 %v1076_v0 }
 0x27c   :  { %975 = vmatpush3.msra.mxu0 %v583_v13 }
 0x27d   :  { %976 = vmatprep.subr.mxu0 %v1076_v0 }
 0x27e   :  { %977 = vmatpush3.msra.mxu0 %v582_v15 }
 0x27f   :  { %978 = vmatprep.subr.mxu0 %v1076_v0 }
 0x280   :  { %979 = vmatpush3.msra.mxu0 %v581_v16 }
 0x2a5   :  { %v564_v12 = vpop.f32.mrf.mxu1 }
 0x2a7   :  { %v947_v14 = vpop.f32.mrf.mxu1 }
 0x321   :  { %v486_v30 = vpop.f32.mrf.mxu0 }
 0x322   :  { %v565_v32 = vadd.f32 %v564_v12, %v486_v30 }
 0x323   :  { %v942_v34 = vpop.f32.mrf.mxu0 }
 0x324   :  { %v569_v35 = vadd.f32 %v568_v31, %v565_v32 }
 0x326   :  { %v577_v36 = vadd.f32 %v825_v33, %v569_v35 }
 0x328   :  { %vm578_vm11 = vcmp.gt.f32.partialorder %v577_v36, 0.0  ;;  %v579_v37 = vmul.f32 0.01, %v577_v36 }
 0x32a   :  { %v580_v38 = vsel %vm578_vm11, %v577_v36, %v579_v37 }
 0x32b   :  { %981 = vmatmul.mubr.f32.vlgmr.msra.gmra.mxu0 %v580_v38 }
 0x3eb   :  { %v670_v43 = vpop.f32.mrf.mxu0 }
 0x3ec   :  { %v671_v44 = vadd.f32 %v826_v42, %v670_v43 }
 0x3ed   :  { %v982_v45 = vpop.f32.mrf.mxu0 }
 0x3ee   :  { %vm674_vm12 = vcmp.gt.f32.partialorder %v671_v44, 0.0  ;;  %v675_v46 = vmul.f32 0.01, %v671_v44 }
 0x3f0   :  { %v676_v47 = vsel %vm674_vm12, %v671_v44, %v675_v46 }
 0x3f1   :  { %1016 = vmatmul.mubr.f32.vlgmr.msra.gmra.mxu1 %v676_v47 }
 0x4b1   :  { %v766_v49 = vpop.f32.mrf.mxu1 }
 0x4b2   :  { %v767_v0 = vadd.f32 %v827_v48, %v766_v49 }
 0x4b3   :  { %v1017_v50 = vpop.f32.mrf.mxu1 }
 0x4b4   :  { %770 = vst [vmem:[#allocation9] sm:$0xff] %v767_v0 }
 0x4b5   :  { %1060 = shalt.err (!%p1057_p12)
}
 0x4b6   :  { %780 = dma.vmem_to_hbm [thread:$0]  %s778_s16, 128, %s1354_s14, [#allocation8]  }
 0x4b7   :  { %1071 = dma.done.wait [#allocation8], 128  }
 0x4b8   :  { %1072 = vsyncadd [#allocation8], 4294967168 }
 0x4b9   :  { %784 = vsyncpa [#allocation7], 1 }
 0x4ba   :  { %785 = vsyncpa [#allocation8], 1 }

</bundles_post_ra>
